<compile_context>
chip_gen: v6e
topology: v6e:2x2x1
jax: 0.10.0
libtpu: 0.0.40
codegen_flags: <defaults>
</compile_context>

<pallas_src>
import functools

import jax
import jax.numpy as jnp
from jax.experimental import pallas as pl
from jax.experimental.pallas import tpu as pltpu


def _luong_kernel(qw_ref, keys_ref, ctx_ref, score_ref,
                  m_acc, d_acc, ctx_acc, *, seq_len, t_blk):
    """One (batch-block, time-block) grid step.

    qw_ref:    (Bb, 1, M)   projected query rows (query @ W_general), keys dtype
    keys_ref:  (Bb, Tb, M)  encoder memory block, storage dtype (f32 or bf16)
    ctx_ref:   (Bb, 1, M)   output context vectors (written at the last time block)
    score_ref: (Bb, 1, Tb)  output pre-softmax alignment scores for this time block
    m_acc:     (Bb, 1, 1)   running max                (VMEM scratch, f32)
    d_acc:     (Bb, 1, 1)   running softmax denominator
    ctx_acc:   (Bb, 1, M)   running unnormalized context
    """
    t = pl.program_id(1)

    @pl.when(t == 0)
    def _init():
        m_acc[...] = jnp.full(m_acc.shape, -jnp.inf, jnp.float32)
        d_acc[...] = jnp.zeros(d_acc.shape, jnp.float32)
        ctx_acc[...] = jnp.zeros(ctx_acc.shape, jnp.float32)

    keys = keys_ref[...]                                   # (Bb, Tb, M)
    qw = qw_ref[...]                                       # (Bb, 1, M)

    ragged_t = (seq_len % t_blk) != 0                      # static (trace-time) bool
    if ragged_t:
        # Zero out-of-range time rows so garbage (possibly inf/nan) in the padded tail
        # of the last block cannot reach the context accumulation (0 * inf = nan).
        row = jax.lax.broadcasted_iota(jnp.int32, (1, t_blk, 1), 1)
        keys = jnp.where(t * t_blk + row < seq_len, keys, jnp.zeros_like(keys))

    # f32 inputs: exact-f32 MXU passes; bf16 inputs: native MXU, f32 accumulate.
    prec = jax.lax.Precision.HIGHEST if keys.dtype == jnp.float32 else None

    # score[b, 0, t] = sum_m qw[b, 0, m] * keys[b, t, m]     (batched MXU matmul)
    score = jax.lax.dot_general(
        qw, keys, dimension_numbers=(((2,), (2,)), ((0,), (0,))),
        preferred_element_type=jnp.float32, precision=prec)    # (Bb, 1, Tb) f32
    score_ref[...] = score.astype(score_ref.dtype)

    if ragged_t:
        # Out-of-range columns must not shift the softmax statistics.
        col = jax.lax.broadcasted_iota(jnp.int32, (1, 1, t_blk), 2)
        score = jnp.where(t * t_blk + col < seq_len, score, -jnp.inf)

    # Online softmax with deferred normalization.
    m_prev = m_acc[...]
    m_new = jnp.maximum(m_prev, jnp.max(score, axis=-1, keepdims=True))
    alpha = jnp.exp(m_prev - m_new)                            # (Bb, 1, 1)
    e = jnp.exp(score - m_new)                                 # (Bb, 1, Tb)
    d_acc[...] = alpha * d_acc[...] + jnp.sum(e, axis=-1, keepdims=True)

    # ctx[b, 0, m] += sum_t e[b, 0, t] * keys[b, t, m]        (batched MXU matmul)
    ctx_part = jax.lax.dot_general(
        e.astype(keys.dtype), keys, dimension_numbers=(((2,), (1,)), ((0,), (0,))),
        preferred_element_type=jnp.float32, precision=prec)    # (Bb, 1, M) f32
    ctx_acc[...] = alpha * ctx_acc[...] + ctx_part
    m_acc[...] = m_new

    @pl.when(t == pl.num_programs(1) - 1)
    def _finalize():
        ctx_ref[...] = (ctx_acc[...] / d_acc[...]).astype(ctx_ref.dtype)


def _choose_blocks(B, T, M, itemsize):
    """Pick (b_blk, t_blk) so the keys block is ~4 MiB: double-buffered inputs plus
    outputs/accumulators stay well inside every generation's VMEM (incl. v7x's 64 MiB)
    while amortizing the ~0.35 us per-grid-step overhead."""
    target = 4 * 1024 * 1024
    if T <= 512:
        t_blk = T                       # full-T block is always layout-legal
    else:
        t_blk = 512                     # score block's lane dim: multiple of 128
        while t_blk > 128 and 8 * t_blk * M * itemsize > 2 * target:
            t_blk //= 2
    per_row = max(t_blk * M * itemsize, 1)
    b_blk = max(8, (target // per_row) // 8 * 8)
    if B >= 16:
        # v7x has 2 TensorCores: keep >= 2 blocks on the 'parallel' batch axis.
        b_blk = min(b_blk, max(8, (B // 2) // 8 * 8))
    if b_blk >= B:
        b_blk = B
    return b_blk, t_blk


def luong_attention_global_general(query, keys, w_general, key_lengths=None):
    """Pallas implementation of LuongAttention.forward (score_fn='general',
    alignment='global').  `key_lengths` is accepted for signature parity but is unused
    in the global branch, matching the PyTorch module.  Pass bf16 `keys` to halve the
    dominant HBM stream (the kernel is dtype-agnostic; accumulation stays f32)."""
    del key_lengths
    B, Q = query.shape
    Bk, T, M = keys.shape
    assert Bk == B and w_general.shape == (Q, M)

    # Tiny (B,Q)x(Q,M) projection hoisted out of the kernel (exact f32), then cast to
    # the keys' streaming dtype so the in-kernel MXU dots see a single input dtype.
    qw = jnp.dot(query.astype(jnp.float32), w_general.astype(jnp.float32),
                 preferred_element_type=jnp.float32,
                 precision=jax.lax.Precision.HIGHEST)            # (B, M)
    qw3 = qw.astype(keys.dtype).reshape(B, 1, M)                 # (B, 1, M)

    itemsize = jnp.dtype(keys.dtype).itemsize
    b_blk, t_blk = _choose_blocks(B, T, M, itemsize)
    grid = (pl.cdiv(B, b_blk), pl.cdiv(T, t_blk))

    kernel = functools.partial(_luong_kernel, seq_len=T, t_blk=t_blk)

    cost = pl.CostEstimate(
        flops=4 * B * T * M,                       # two batched matmuls
        transcendentals=B * T,                     # exp
        bytes_accessed=(B * T * M + B * M) * itemsize + 4 * (B * M + B * T),
    )

    ctx3, score3 = pl.pallas_call(
        kernel,
        out_shape=(
            jax.ShapeDtypeStruct((B, 1, M), jnp.float32),
            jax.ShapeDtypeStruct((B, 1, T), jnp.float32),
        ),
        grid_spec=pltpu.PrefetchScalarGridSpec(
            num_scalar_prefetch=0,
            grid=grid,
            in_specs=[
                pl.BlockSpec((b_blk, 1, M), lambda b, t: (b, 0, 0)),       # qw
                pl.BlockSpec((b_blk, t_blk, M), lambda b, t: (b, t, 0)),   # keys
            ],
            out_specs=[
                pl.BlockSpec((b_blk, 1, M), lambda b, t: (b, 0, 0)),       # context
                pl.BlockSpec((b_blk, 1, t_blk), lambda b, t: (b, 0, t)),   # scores
            ],
            scratch_shapes=[
                pltpu.VMEM((b_blk, 1, 1), jnp.float32),    # running max
                pltpu.VMEM((b_blk, 1, 1), jnp.float32),    # running denominator
                pltpu.VMEM((b_blk, 1, M), jnp.float32),    # unnormalized context
            ],
        ),
        compiler_params=pltpu.CompilerParams(
            dimension_semantics=("parallel", "arbitrary"),
            # ~4 MiB keys blocks double-buffered + outputs/accumulators fit easily;
            # 48 MiB leaves headroom on v5e/v6e (128 MiB) and v7x (64 MiB physical).
            vmem_limit_bytes=48 * 1024 * 1024,
        ),
        cost_estimate=cost,
    )(qw3, keys)

    return ctx3.reshape(B, M), score3.reshape(B, T)


def _reference(query, keys, w_general):
    """Pure-JAX reference mirroring the PyTorch forward (general + global)."""
    hp = jax.lax.Precision.HIGHEST
    weighted_keys = jnp.einsum("btm,qm->btq", keys, w_general, precision=hp)  # Linear(keys)
    score = jnp.einsum("bq,btq->bt", query, weighted_keys, precision=hp)      # _general_score
    weight = jax.nn.softmax(score, axis=-1)                                   # softmax(dim=-1)
    context = jnp.einsum("bt,btm->bm", weight, keys, precision=hp)            # global context
    return context, score


if __name__ == "__main__":
    # Module hyper-parameters (consistent with __init__):
    attention_window_size = 4          # unused in the 'global' branch
    num_units = 16
    query_size = 16                    # Q
    memory_size = 32                   # M

    B, T = 2, 8

    key = jax.random.PRNGKey(0)
    k_q, k_k, k_wg, k_wq, k_wp, k_wa = jax.random.split(key, 6)

    query = jax.random.normal(k_q, (B, query_size), dtype=jnp.float32)
    keys = jax.random.normal(k_k, (B, T, memory_size), dtype=jnp.float32)
    key_lengths = jnp.full((B,), float(T), dtype=jnp.float32)

    # Deterministic parameter init (shapes from __init__).  Only general_memory_layer
    # participates in the general+global forward; the others exist only for parity.
    scale = 0.1
    w_general = scale * jax.random.normal(k_wg, (query_size, memory_size), jnp.float32)
    _w_query = scale * jax.random.normal(k_wq, (num_units, query_size), jnp.float32)   # query_layer (local only)
    _w_pred = scale * jax.random.normal(k_wp, (1, num_units), jnp.float32)             # predictive_alignment_layer
    _w_align = scale * jax.random.normal(k_wa, (1, num_units), jnp.float32)            # alignment_layer

    ctx_ref, score_ref = _reference(query, keys, w_general)

    # f32-streamed keys: exact path, tight tolerance vs the PyTorch-equivalent reference.
    ctx, score = luong_attention_global_general(query, keys, w_general, key_lengths)
    jax.block_until_ready((ctx, score))
    assert jnp.allclose(ctx, ctx_ref, atol=1e-5, rtol=1e-5), "context mismatch (f32)"
    assert jnp.allclose(score, score_ref, atol=1e-5, rtol=1e-5), "score mismatch (f32)"

    # bf16-streamed keys: the production (bandwidth-optimal) path, coarse tolerance.
    ctx_bf, score_bf = luong_attention_global_general(
        query, keys.astype(jnp.bfloat16), w_general, key_lengths)
    jax.block_until_ready((ctx_bf, score_bf))
    assert jnp.allclose(ctx_bf, ctx_ref, atol=1e-1, rtol=1e-1), "context mismatch (bf16)"
    assert jnp.allclose(score_bf, score_ref, atol=1e-1, rtol=1e-1), "score mismatch (bf16)"

    print("KERNEL_OK")
</pallas_src>

<mosaic_0001>
module attributes {stable_mosaic.version = 11 : i64} {
  func.func @_luong_kernel(%arg0: i32, %arg1: i32, %arg2: memref<2x1x32xf32, #tpu.memory_space<vmem>>, %arg3: memref<2x8x32xf32, #tpu.memory_space<vmem>>, %arg4: memref<2x1x32xf32, #tpu.memory_space<vmem>>, %arg5: memref<2x1x8xf32, #tpu.memory_space<vmem>>, %arg6: memref<2x1x1xf32, #tpu.memory_space<vmem>>, %arg7: memref<2x1x1xf32, #tpu.memory_space<vmem>>, %arg8: memref<2x1x32xf32, #tpu.memory_space<vmem>>) attributes {dimension_semantics = [#tpu.dimension_semantics<parallel>, #tpu.dimension_semantics<arbitrary>], iteration_bounds = array<i64: 1, 1>, scalar_prefetch = 0 : i64, scratch_operands = 3 : i64, tpu.core_type = #tpu.core_type<tc>, window_params = [{transform_indices = @transform_0, window_bounds = array<i64: 2, 1, 32>}, {transform_indices = @transform_1, window_bounds = array<i64: 2, 8, 32>}, {transform_indices = @transform_2, window_bounds = array<i64: 2, 1, 32>}, {transform_indices = @transform_3, window_bounds = array<i64: 2, 1, 8>}]} {
    %c0_i32 = arith.constant 0 : i32
    %0 = arith.cmpi eq, %arg1, %c0_i32 : i32
    %1 = arith.extui %0 : i1 to i32
    %c0_i32_0 = arith.constant 0 : i32
    %2 = arith.cmpi ne, %1, %c0_i32_0 : i32
    scf.if %2 {
      %cst_32 = arith.constant 0xFF800000 : f32
      %32 = vector.broadcast %cst_32 : f32 to vector<2x1x1xf32>
      %c0_33 = arith.constant 0 : index
      %c0_34 = arith.constant 0 : index
      %c0_35 = arith.constant 0 : index
      %33 = vector.load %arg6[%c0_33, %c0_34, %c0_35] : memref<2x1x1xf32, #tpu.memory_space<vmem>>, vector<2x1x1xf32>
      tpu.vector_store %arg6[%c0_33, %c0_34, %c0_35], %32 {strides = array<i32>} : memref<2x1x1xf32, #tpu.memory_space<vmem>>, vector<2x1x1xf32>,
      %cst_36 = arith.constant 0.000000e+00 : f32
      %34 = vector.broadcast %cst_36 : f32 to vector<2x1x1xf32>
      %c0_37 = arith.constant 0 : index
      %c0_38 = arith.constant 0 : index
      %c0_39 = arith.constant 0 : index
      %35 = vector.load %arg7[%c0_37, %c0_38, %c0_39] : memref<2x1x1xf32, #tpu.memory_space<vmem>>, vector<2x1x1xf32>
      tpu.vector_store %arg7[%c0_37, %c0_38, %c0_39], %34 {strides = array<i32>} : memref<2x1x1xf32, #tpu.memory_space<vmem>>, vector<2x1x1xf32>,
      %cst_40 = arith.constant 0.000000e+00 : f32
      %36 = vector.broadcast %cst_40 : f32 to vector<2x1x32xf32>
      %c0_41 = arith.constant 0 : index
      %c0_42 = arith.constant 0 : index
      %c0_43 = arith.constant 0 : index
      %37 = vector.load %arg8[%c0_41, %c0_42, %c0_43] : memref<2x1x32xf32, #tpu.memory_space<vmem>>, vector<2x1x32xf32>
      tpu.vector_store %arg8[%c0_41, %c0_42, %c0_43], %36 {strides = array<i32>} : memref<2x1x32xf32, #tpu.memory_space<vmem>>, vector<2x1x32xf32>,
    } else {
    }
    %c0 = arith.constant 0 : index
    %c0_1 = arith.constant 0 : index
    %c0_2 = arith.constant 0 : index
    %3 = vector.load %arg3[%c0, %c0_1, %c0_2] : memref<2x8x32xf32, #tpu.memory_space<vmem>>, vector<2x8x32xf32>
    %c0_3 = arith.constant 0 : index
    %c0_4 = arith.constant 0 : index
    %c0_5 = arith.constant 0 : index
    %4 = vector.load %arg2[%c0_3, %c0_4, %c0_5] : memref<2x1x32xf32, #tpu.memory_space<vmem>>, vector<2x1x32xf32>
    %cst = arith.constant dense<0.000000e+00> : vector<2x1x8xf32>
    %5 = tpu.matmul %4, %3, %cst {dimension_numbers = #tpu.dot_dimension_numbers<[2], [2], [1], [1], [0, 0, 0, 1, 1, 1], [0], [0]>, precision = #tpu.contract_precision<fp32>} : vector<2x1x32xf32>, vector<2x8x32xf32>, vector<2x1x8xf32> -> vector<2x1x8xf32>
    %c0_6 = arith.constant 0 : index
    %c0_7 = arith.constant 0 : index
    %c0_8 = arith.constant 0 : index
    %6 = vector.load %arg5[%c0_6, %c0_7, %c0_8] : memref<2x1x8xf32, #tpu.memory_space<vmem>>, vector<2x1x8xf32>
    tpu.vector_store %arg5[%c0_6, %c0_7, %c0_8], %5 {strides = array<i32>} : memref<2x1x8xf32, #tpu.memory_space<vmem>>, vector<2x1x8xf32>,
    %c0_9 = arith.constant 0 : index
    %c0_10 = arith.constant 0 : index
    %c0_11 = arith.constant 0 : index
    %7 = vector.load %arg6[%c0_9, %c0_10, %c0_11] : memref<2x1x1xf32, #tpu.memory_space<vmem>>, vector<2x1x1xf32>
    %cst_12 = arith.constant dense<0xFF800000> : vector<2x1xf32>
    %8 = vector.multi_reduction <maximumf>, %5, %cst_12 [2] : vector<2x1x8xf32> to vector<2x1xf32>
    %9 = vector.shape_cast %8 : vector<2x1xf32> to vector<2x1x1xf32>
    %10 = arith.maximumf %7, %9 : vector<2x1x1xf32>
    %11 = arith.subf %7, %10 : vector<2x1x1xf32>
    %12 = math.exp %11 : vector<2x1x1xf32>
    %13 = vector.broadcast %10 : vector<2x1x1xf32> to vector<2x1x8xf32>
    %14 = arith.subf %5, %13 : vector<2x1x8xf32>
    %15 = math.exp %14 : vector<2x1x8xf32>
    %c0_13 = arith.constant 0 : index
    %c0_14 = arith.constant 0 : index
    %c0_15 = arith.constant 0 : index
    %16 = vector.load %arg7[%c0_13, %c0_14, %c0_15] : memref<2x1x1xf32, #tpu.memory_space<vmem>>, vector<2x1x1xf32>
    %17 = arith.mulf %12, %16 : vector<2x1x1xf32>
    %cst_16 = arith.constant dense<0.000000e+00> : vector<2x1xf32>
    %18 = vector.multi_reduction <add>, %15, %cst_16 [2] : vector<2x1x8xf32> to vector<2x1xf32>
    %19 = vector.shape_cast %18 : vector<2x1xf32> to vector<2x1x1xf32>
    %20 = arith.addf %17, %19 : vector<2x1x1xf32>
    %c0_17 = arith.constant 0 : index
    %c0_18 = arith.constant 0 : index
    %c0_19 = arith.constant 0 : index
    %21 = vector.load %arg7[%c0_17, %c0_18, %c0_19] : memref<2x1x1xf32, #tpu.memory_space<vmem>>, vector<2x1x1xf32>
    tpu.vector_store %arg7[%c0_17, %c0_18, %c0_19], %20 {strides = array<i32>} : memref<2x1x1xf32, #tpu.memory_space<vmem>>, vector<2x1x1xf32>,
    %cst_20 = arith.constant dense<0.000000e+00> : vector<2x1x32xf32>
    %22 = tpu.matmul %15, %3, %cst_20 {dimension_numbers = #tpu.dot_dimension_numbers<[2], [1], [1], [2], [0, 0, 0, 1, 1, 2], [0], [0]>, precision = #tpu.contract_precision<fp32>} : vector<2x1x8xf32>, vector<2x8x32xf32>, vector<2x1x32xf32> -> vector<2x1x32xf32>
    %c0_21 = arith.constant 0 : index
    %c0_22 = arith.constant 0 : index
    %c0_23 = arith.constant 0 : index
    %23 = vector.load %arg8[%c0_21, %c0_22, %c0_23] : memref<2x1x32xf32, #tpu.memory_space<vmem>>, vector<2x1x32xf32>
    %24 = vector.broadcast %12 : vector<2x1x1xf32> to vector<2x1x32xf32>
    %25 = arith.mulf %24, %23 : vector<2x1x32xf32>
    %26 = arith.addf %25, %22 : vector<2x1x32xf32>
    %c0_24 = arith.constant 0 : index
    %c0_25 = arith.constant 0 : index
    %c0_26 = arith.constant 0 : index
    %27 = vector.load %arg8[%c0_24, %c0_25, %c0_26] : memref<2x1x32xf32, #tpu.memory_space<vmem>>, vector<2x1x32xf32>
    tpu.vector_store %arg8[%c0_24, %c0_25, %c0_26], %26 {strides = array<i32>} : memref<2x1x32xf32, #tpu.memory_space<vmem>>, vector<2x1x32xf32>,
    %c0_27 = arith.constant 0 : index
    %c0_28 = arith.constant 0 : index
    %c0_29 = arith.constant 0 : index
    %28 = vector.load %arg6[%c0_27, %c0_28, %c0_29] : memref<2x1x1xf32, #tpu.memory_space<vmem>>, vector<2x1x1xf32>
    tpu.vector_store %arg6[%c0_27, %c0_28, %c0_29], %10 {strides = array<i32>} : memref<2x1x1xf32, #tpu.memory_space<vmem>>, vector<2x1x1xf32>,
    %c0_i32_30 = arith.constant 0 : i32
    %29 = arith.cmpi eq, %arg1, %c0_i32_30 : i32
    %30 = arith.extui %29 : i1 to i32
    %c0_i32_31 = arith.constant 0 : i32
    %31 = arith.cmpi ne, %30, %c0_i32_31 : i32
    scf.if %31 {
      %c0_32 = arith.constant 0 : index
      %c0_33 = arith.constant 0 : index
      %c0_34 = arith.constant 0 : index
      %32 = vector.load %arg8[%c0_32, %c0_33, %c0_34] : memref<2x1x32xf32, #tpu.memory_space<vmem>>, vector<2x1x32xf32>
      %c0_35 = arith.constant 0 : index
      %c0_36 = arith.constant 0 : index
      %c0_37 = arith.constant 0 : index
      %33 = vector.load %arg7[%c0_35, %c0_36, %c0_37] : memref<2x1x1xf32, #tpu.memory_space<vmem>>, vector<2x1x1xf32>
      %34 = vector.broadcast %33 : vector<2x1x1xf32> to vector<2x1x32xf32>
      %35 = arith.divf %32, %34 : vector<2x1x32xf32>
      %c0_38 = arith.constant 0 : index
      %c0_39 = arith.constant 0 : index
      %c0_40 = arith.constant 0 : index
      %36 = vector.load %arg4[%c0_38, %c0_39, %c0_40] : memref<2x1x32xf32, #tpu.memory_space<vmem>>, vector<2x1x32xf32>
      tpu.vector_store %arg4[%c0_38, %c0_39, %c0_40], %35 {strides = array<i32>} : memref<2x1x32xf32, #tpu.memory_space<vmem>>, vector<2x1x32xf32>,
    } else {
    }
    return
  }
  func.func @transform_0(%arg0: i32, %arg1: i32) -> (i32, i32, i32) {
    %c0_i32 = arith.constant 0 : i32
    %c0_i32_0 = arith.constant 0 : i32
    %c0_i32_1 = arith.constant 0 : i32
    return %arg0, %c0_i32, %c0_i32_0 : i32, i32, i32
  }
  func.func @transform_1(%arg0: i32, %arg1: i32) -> (i32, i32, i32) {
    %c0_i32 = arith.constant 0 : i32
    %c0_i32_0 = arith.constant 0 : i32
    return %arg0, %arg1, %c0_i32 : i32, i32, i32
  }
  func.func @transform_2(%arg0: i32, %arg1: i32) -> (i32, i32, i32) {
    %c0_i32 = arith.constant 0 : i32
    %c0_i32_0 = arith.constant 0 : i32
    %c0_i32_1 = arith.constant 0 : i32
    return %arg0, %c0_i32, %c0_i32_0 : i32, i32, i32
  }
  func.func @transform_3(%arg0: i32, %arg1: i32) -> (i32, i32, i32) {
    %c0_i32 = arith.constant 0 : i32
    %c0_i32_0 = arith.constant 0 : i32
    return %arg0, %c0_i32, %arg1 : i32, i32, i32
  }
}

</mosaic_0001>

<bundles_post_ra>
// kernel: tpu_custom_call.1
= control target key start
LH: loop header
LB: loop body
LE: loop exit
PB: predicated region body
PF: predicated region fallthrough
CT: control target
= control target key end

     0   :  { %9 = vsyncpa [#allocation6], 0  ;;  %s2496_s0 = inlined_call_operand.hbm [shape: f32[2,1,32], index: 0, kind: input, shape index: {}]   ;;  %s2497_s1 = inlined_call_operand.hbm [shape: f32[2,8,32], index: 1, kind: input, shape index: {}]   ;;  %s2498_s2 = inlined_call_operand.hbm [shape: f32[2,1,32], index: 2, kind: output, shape index: {0}]   ;;  %s2499_s3 = inlined_call_operand.hbm [shape: f32[2,1,8], index: 3, kind: output, shape index: {1}]  }
   0x1   :  { %10 = vsyncpa [#allocation9], 0 }
   0x2   :  { %11 = vsyncpa [#allocation7], 0 }
   0x3   :  { %12 = vsyncpa [#allocation12], 0  ;;  %s2297_s12 = smov [#allocation5]  }
   0x4   :  { %s18_s13 = sshll.u32 %s2297_s12, 4  ;;  %s19_s13 = int_to_ptr.vmem [resolvable:$true] %s18_s13 }
   0x5   :  { %s2217_s14 = scalar_lea.vmem %s19_s13, 32  ;;  %p2222_p1 = scmp.lt.s32.totalorder %s19_s13, %s19_s13 }
   0x6   :  { %p2218_p0 = scmp.ne.s32.totalorder %s19_s13, %s2217_s14  ;;  %p2223_p2 = scmp.lt.s32.totalorder %s2217_s14, %s2217_s14 }
   0x8   :  { %p2224_p3 = por %p2223_p2, %p2222_p1 }
   0xa   :  { %p2225_p4 = pnand %p2224_p3, %p2218_p0 }
   0xc   :  { %2228 = shalt.err (!%p2225_p4)
}
   0xd   :  { %s2298_s15 = smov 16   ;;  %s2299_s16 = smov 1  }
   0xe   :  { %24 = dma.hbm_to_vmem [thread:$0]  %s2496_s0, 32, %s19_s13, [#allocation6], %s2298_s15, %s2298_s15, %s2299_s16  }
   0xf   :  { %s2300_s19 = smov [#allocation8]  }
  0x10   :  { %s30_s20 = sshll.u32 %s2300_s19, 4  ;;  %s31_s20 = int_to_ptr.vmem [resolvable:$true] %s30_s20 }
  0x11   :  { %s2237_s21 = scalar_lea.vmem %s31_s20, 256  ;;  %p2242_p6 = scmp.lt.s32.totalorder %s31_s20, %s31_s20 }
  0x12   :  { %p2238_p5 = scmp.ne.s32.totalorder %s31_s20, %s2237_s21  ;;  %p2243_p7 = scmp.lt.s32.totalorder %s2237_s21, %s2237_s21 }
  0x14   :  { %p2244_p8 = por %p2243_p7, %p2242_p6 }
  0x16   :  { %p2245_p9 = pnand %p2244_p8, %p2238_p5 }
  0x18   :  { %2248 = shalt.err (!%p2245_p9)
}
  0x19   :  { %s2301_s22 = smov 128   ;;  %s2302_s23 = smov 8  }
  0x1a   :  { %36 = dma.hbm_to_vmem [thread:$0]  %s2497_s1, 256, %s31_s20, [#allocation9], %s2301_s22, %s2301_s22, %s2302_s23  }
  0x1b   :  { %2289 = dma.done.wait [#allocation6], 32  }
  0x1c   :  { %2290 = vsyncadd [#allocation6], 4294967264 }
  0x1d   :  { %2291 = dma.done.wait [#allocation9], 256  }
  0x1e   :  { %2292 = vsyncadd [#allocation9], 4294967040  ;;  %v2303_v0 = vmov 0.0   ;;  %vm2304_vm0 = vmmov 0   ;;  %vm59_vm1 = vcmask 261120   ;;  %v2344_v1 = vld [vmem:[#allocation8] sm:$0xff] }
  0x1f   :  { %2063 = vmatprep.subr.mxu0 %v2303_v0  ;;  %2065 = vmatprep.mubr.msk.f32.mxu0 %vm2304_vm0, %v2303_v0  ;;  %v57_v2 = vld [vmem:[#allocation5] sm:$0x1]  ;;  %v2346_v3 = vld [vmem:[#allocation8 + $0x8] sm:$0xff]  ;;  %v64_v4 = vsel %vm59_vm1, %v2344_v1, 0  ;;  %v58_v7 = vld [vmem:[#allocation5 + $0x1] sm:$0x1] }
  0x20   :  { %2068 = vmatprep.subr.mxu1 %v2303_v0  ;;  %2070 = vmatprep.mubr.msk.f32.mxu1 %vm2304_vm0, %v2303_v0  ;;  %v61_v5 = vsel %vm59_vm1, %v57_v2, 0  ;;  %v516_v6 = vsel %vm59_vm1, %v2346_v3, 0  ;;  %v97_v8 = vand.u32 4294901760, %v64_v4  ;;  %v513_v10 = vsel %vm59_vm1, %v58_v7, 0  ;;  %s2307_s0 = smov [#allocation11]  }
  0x21   :  { %v132_v9 = vand.u32 4294901760, %v61_v5  ;;  %v549_v13 = vand.u32 4294901760, %v516_v6  ;;  %v584_v14 = vand.u32 4294901760, %v513_v10  ;;  %v2380_v29 = vand.u32 4294901760, %v2344_v1  ;;  %s1998_s1 = sshll.u32 %s2307_s0, 4  ;;  %s1999_s1 = int_to_ptr.vmem [resolvable:$true] %s1998_s1 }
  0x22   :  { %2064 = vmatpush3.xpose.msra.mxu0 %v97_v8  ;;  %v174_v12 = vsub.f32 %v64_v4, %v97_v8  ;;  %vm47_vm2 = vcmask 0   ;;  %v2305_v30 = vmov -inf   ;;  %vm964_vm3 = vcmask 57344   ;;  %s2249_s26 = scalar_lea.vmem %s1999_s1, 32  ;;  %p2254_p11 = scmp.lt.s32.totalorder %s1999_s1, %s1999_s1 }
  0x23   :  { %v133_v11 = vsub.f32 %v61_v5, %v132_v9  ;;  %2073 = vmatprep.subr.mxu0 %v2303_v0  ;;  %v626_v19 = vsub.f32 %v516_v6, %v549_v13  ;;  %v585_v20 = vsub.f32 %v513_v10, %v584_v14  ;;  %48 = vst.msk [vmem:[#allocation2] sm:$0x1] %vm47_vm2, %v2305_v30  ;;  %49 = vst.msk [vmem:[#allocation2 + $0x1] sm:$0x1] %vm47_vm2, %v2305_v30  ;;  %v2306_v6 = vmov 0   ;;  %p2250_p10 = scmp.ne.s32.totalorder %s1999_s1, %s2249_s26  ;;  %p2255_p12 = scmp.lt.s32.totalorder %s2249_s26, %s2249_s26 }
  0x24   :  { %v175_v16 = vand.u32 4294901760, %v174_v12  ;;  %50 = vst.msk [vmem:[#allocation3] sm:$0x1] %vm47_vm2, %v2303_v0  ;;  %51 = vst.msk [vmem:[#allocation3 + $0x1] sm:$0x1] %vm47_vm2, %v2303_v0  ;;  %2195 = vset.pattern.permute.xlu1 %v2306_v6  ;;  %2196 = vset.pattern.permute.xlu0 %v2306_v6  ;;  %vm1022_vm4 = vcmask 64512  }
  0x25   :  { %v134_v15 = vand.u32 4294901760, %v133_v11  ;;  %v586_v23 = vand.u32 4294901760, %v585_v20  ;;  %v627_v24 = vand.u32 4294901760, %v626_v19  ;;  %vm52_vm5 = vcmask 253952   ;;  %p2256_p13 = por %p2255_p12, %p2254_p11 }
  0x26   :  { %v176_v18 = vsub.f32 %v174_v12, %v175_v16  ;;  %53 = vst.msk [vmem:[#allocation4] sm:$0x1] %vm52_vm5, %v2303_v0  ;;  %54 = vst.msk [vmem:[#allocation4 + $0x1] sm:$0x1] %vm52_vm5, %v2303_v0 }
  0x27   :  { %v135_v17 = vsub.f32 %v133_v11, %v134_v15  ;;  %v587_v25 = vsub.f32 %v585_v20, %v586_v23  ;;  %v628_v26 = vsub.f32 %v626_v19, %v627_v24  ;;  %p2257_p0 = pnand %p2256_p13, %p2250_p10 }
  0x28   :  { %v177_v22 = vand.u32 4294901760, %v176_v18 }
  0x29   :  { %v136_v21 = vand.u32 4294901760, %v135_v17  ;;  %v588_v27 = vand.u32 4294901760, %v587_v25  ;;  %v629_v28 = vand.u32 4294901760, %v628_v26 }
  0x2a   :  { %2069 = vmatpush3.xpose.msra.mxu1 %v177_v22  ;;  %v2401_v7 = vld [vmem:[#allocation2] sm:$0x1] }
  0x2b   :  { %2066 = vmatmul.mubr.f32.vlgmr.msra.gmra.mxu0 %v136_v21  ;;  %2078 = vmatprep.subr.mxu1 %v2303_v0 }
  0x2c   :  { %2074 = vmatpush3.xpose.msra.mxu0 %v174_v12  ;;  %2075 = vmatprep.mubr.msk.f32.mxu0 %vm2304_vm0, %v2303_v0 }
  0x2d   :  { %2083 = vmatprep.subr.mxu0 %v2303_v0  ;;  %2071 = vmatmul.mubr.f32.vlgmr.msra.gmra.mxu1 %v132_v9 }
  0x2e   :  { %2079 = vmatpush3.xpose.msra.mxu1 %v97_v8  ;;  %2080 = vmatprep.mubr.msk.f32.mxu1 %vm2304_vm0, %v2303_v0 }
  0x2f   :  { %2076 = vmatmul.mubr.f32.vlgmr.msra.gmra.mxu0 %v133_v11  ;;  %2088 = vmatprep.subr.mxu1 %v2303_v0  ;;  %v2411_v11 = vld [vmem:[#allocation2 + $0x1] sm:$0x1] }
  0x30   :  { %2084 = vmatpush3.xpose.msra.mxu0 %v175_v16  ;;  %2085 = vmatprep.mubr.msk.f32.mxu0 %vm2304_vm0, %v2303_v0 }
  0x31   :  { %2081 = vmatmul.mubr.f32.vlgmr.msra.gmra.mxu1 %v134_v15  ;;  %2093 = vmatprep.subr.mxu0 %v2303_v0 }
  0x32   :  { %2089 = vmatpush3.xpose.msra.mxu1 %v97_v8  ;;  %2090 = vmatprep.mubr.msk.f32.mxu1 %vm2304_vm0, %v2303_v0 }
  0x33   :  { %2086 = vmatmul.mubr.f32.vlgmr.msra.gmra.mxu0 %v132_v9  ;;  %2098 = vmatprep.subr.mxu1 %v2303_v0 }
  0x34   :  { %2094 = vmatpush3.xpose.msra.mxu0 %v549_v13  ;;  %2095 = vmatprep.mubr.msk.f32.mxu0 %vm2304_vm0, %v2303_v0 }
  0x35   :  { %2091 = vmatmul.mubr.f32.vlgmr.msra.gmra.mxu1 %v132_v9  ;;  %2103 = vmatprep.subr.mxu0 %v2303_v0 }
  0x36   :  { %2099 = vmatpush3.xpose.msra.mxu1 %v629_v28  ;;  %2100 = vmatprep.mubr.msk.f32.mxu1 %vm2304_vm0, %v2303_v0 }
  0x37   :  { %2096 = vmatmul.mubr.f32.vlgmr.msra.gmra.mxu0 %v588_v27  ;;  %2108 = vmatprep.subr.mxu1 %v2303_v0  ;;  %v1506_v27 = vand.u32 4294901760, %v2346_v3 }
  0x38   :  { %2104 = vmatpush3.xpose.msra.mxu0 %v626_v19  ;;  %2105 = vmatprep.mubr.msk.f32.mxu0 %vm2304_vm0, %v2303_v0  ;;  %v988_v19 = vlaneseq }
  0x39   :  { %2101 = vmatmul.mubr.f32.vlgmr.msra.gmra.mxu1 %v584_v14  ;;  %2113 = vmatprep.subr.mxu0 %v2303_v0 }
  0x3a   :  { %2109 = vmatpush3.xpose.msra.mxu1 %v549_v13  ;;  %2110 = vmatprep.mubr.msk.f32.mxu1 %vm2304_vm0, %v2303_v0 }
  0x3b   :  { %2106 = vmatmul.mubr.f32.vlgmr.msra.gmra.mxu0 %v585_v20  ;;  %2118 = vmatprep.subr.mxu1 %v2303_v0  ;;  %v989_v20 = vshrl.u32 %v988_v19, 7 }
  0x3c   :  { %2114 = vmatpush3.xpose.msra.mxu0 %v627_v24  ;;  %2115 = vmatprep.mubr.msk.f32.mxu0 %vm2304_vm0, %v2303_v0 }
  0x3d   :  { %2111 = vmatmul.mubr.f32.vlgmr.msra.gmra.mxu1 %v586_v23  ;;  %2123 = vmatprep.subr.mxu0 %v2303_v0  ;;  %v2424_v21 = vsub.s32 0, %v989_v20 }
  0x3e   :  { %2119 = vmatpush3.xpose.msra.mxu1 %v549_v13  ;;  %2120 = vmatprep.mubr.msk.f32.mxu1 %vm2304_vm0, %v2303_v0 }
  0x3f   :  { %2116 = vmatmul.mubr.f32.vlgmr.msra.gmra.mxu0 %v584_v14  ;;  %2128 = vmatprep.subr.mxu1 %v2303_v0 }
  0x40   :  { %2124 = vmatpush3.msra.mxu0 %v2380_v29  ;;  %2125 = vmatprep.mubr.msk.f32.mxu0 %vm2304_vm0, %v2303_v0 }
  0x41   :  { %2121 = vmatmul.mubr.f32.vlgmr.msra.gmra.mxu1 %v584_v14  ;;  %2133 = vmatprep.subr.mxu0 %v2303_v0  ;;  %v1134_v14 = vsub.f32 %v2344_v1, %v2380_v29 }
  0x42   :  { %2130 = vmatprep.mubr.msk.f32.mxu1 %vm2304_vm0, %v2303_v0 }
  0x43   :  { %v1135_v16 = vand.u32 4294901760, %v1134_v14 }
  0x45   :  { %v1136_v17 = vsub.f32 %v1134_v14, %v1135_v16 }
  0x47   :  { %v1137_v18 = vand.u32 4294901760, %v1136_v17 }
  0x49   :  { %2129 = vmatpush3.msra.mxu1 %v1137_v18 }
  0x4a   :  { %2138 = vmatprep.subr.mxu1 %v2303_v0 }
  0xeb   :  { %v138_v31 = vpop.f32.mrf.mxu0 }
  0xed   :  { %v2067_v32 = vpop.f32.mrf.mxu0  ;;  %v214_v33 = vpop.f32.mrf.mxu1 }
  0xee   :  { %v215_v34 = vadd.f32 %v214_v33, %v138_v31  ;;  %v1583_v31 = vsub.f32 %v2346_v3, %v1506_v27 }
  0xef   :  { %v288_v35 = vpop.f32.mrf.mxu0  ;;  %v2072_v36 = vpop.f32.mrf.mxu1 }
  0xf0   :  { %v289_v37 = vadd.f32 %v288_v35, %v215_v34  ;;  %v1584_v36 = vand.u32 4294901760, %v1583_v31 }
  0xf1   :  { %v2077_v38 = vpop.f32.mrf.mxu0  ;;  %v362_v39 = vpop.f32.mrf.mxu1 }
  0xf2   :  { %v363_v40 = vadd.f32 %v362_v39, %v289_v37  ;;  %v1585_v3 = vsub.f32 %v1583_v31, %v1584_v36 }
  0xf3   :  { %v436_v41 = vpop.f32.mrf.mxu0  ;;  %v2082_v42 = vpop.f32.mrf.mxu1 }
  0xf4   :  { %v437_v43 = vadd.f32 %v436_v41, %v363_v40  ;;  %v1586_v41 = vand.u32 4294901760, %v1585_v3 }
  0xf5   :  { %v2087_v44 = vpop.f32.mrf.mxu0  ;;  %v508_v45 = vpop.f32.mrf.mxu1 }
  0xf6   :  { %v509_v46 = vadd.f32 %v508_v45, %v437_v43 }
  0xf7   :  { %v590_v47 = vpop.f32.mrf.mxu0  ;;  %v2092_v48 = vpop.f32.mrf.mxu1 }
  0xf8   :  { %v969_v50 = vsel %vm964_vm3, %v509_v46, -inf  ;;  %965 = vst.msk [vmem:[#allocation11] sm:$0x1] %vm964_vm3, %v509_v46 }
  0xf9   :  { %v2097_v49 = vpop.f32.mrf.mxu0  ;;  %v666_v51 = vpop.f32.mrf.mxu1  ;;  %970 = vmax.xlane.f32.xlu0 %v969_v50 }
  0xfa   :  { %v667_v52 = vadd.f32 %v666_v51, %v590_v47 }
  0xfb   :  { %v740_v53 = vpop.f32.mrf.mxu0  ;;  %v2102_v54 = vpop.f32.mrf.mxu1 }
  0xfc   :  { %v741_v55 = vadd.f32 %v740_v53, %v667_v52  ;;  %v1007_v52 = vld [vmem:[#allocation3] sm:$0x1] }
  0xfd   :  { %v2107_v56 = vpop.f32.mrf.mxu0  ;;  %v814_v57 = vpop.f32.mrf.mxu1 }
  0xfe   :  { %v815_v58 = vadd.f32 %v814_v57, %v741_v55  ;;  %v1008_v57 = vld [vmem:[#allocation3 + $0x1] sm:$0x1] }
  0xff   :  { %v888_v59 = vpop.f32.mrf.mxu0  ;;  %v2112_v60 = vpop.f32.mrf.mxu1 }
 0x100   :  { %v889_v61 = vadd.f32 %v888_v59, %v815_v58 }
 0x101   :  { %v2117_v62 = vpop.f32.mrf.mxu0  ;;  %v960_v63 = vpop.f32.mrf.mxu1 }
 0x102   :  { %v961_v2 = vadd.f32 %v960_v63, %v889_v61 }
 0x103   :  { %v2122_v4 = vpop.f32.mrf.mxu1 }
 0x104   :  { %966 = vst.msk [vmem:[#allocation11 + $0x1] sm:$0x1] %vm964_vm3, %v961_v2  ;;  %v972_v5 = vsel %vm964_vm3, %v961_v2, -inf }
 0x105   :  { %973 = vmax.xlane.f32.xlu0 %v972_v5 }
 0x182   :  { %v971_v8 = vpop.xlane.xlu0 %970 }
 0x183   :  { %v2404_v9 = vmax.f32 %v2401_v7, %v971_v8 }
 0x185   :  { %v977_v10 = vsub.f32 %v2401_v7, %v2404_v9  ;;  %1948 = vst.msk [vmem:[#allocation2] sm:$0x1] %vm47_vm2, %v2404_v9  ;;  %985 = vperm.xlu1 %2195, %v2404_v9  }
 0x187   :  { %v979_v49 = vmul.f32 1.442695, %v977_v10 }
 0x18e   :  { %v974_v12 = vpop.xlane.xlu0 %973 }
 0x18f   :  { %v2414_v13 = vmax.f32 %v2411_v11, %v974_v12 }
 0x191   :  { %v978_v15 = vsub.f32 %v2411_v11, %v2414_v13  ;;  %1949 = vst.msk [vmem:[#allocation2 + $0x1] sm:$0x1] %vm47_vm2, %v2414_v13  ;;  %994 = vperm.xlu1 %2195, %v2414_v13  }
 0x193   :  { %v981_v50 = vmul.f32 1.442695, %v978_v15 }
 0x200   :  { %v986_v22 = vpop.permute.xlu1 %985 }
 0x201   :  { %v991_v1 = vrot.slane %v986_v22, %v2424_v21 }
 0x203   :  { %v1001_v23 = vsub.f32 %v509_v46, %v991_v1 }
 0x205   :  { %v1003_v24 = vmul.f32 1.442695, %v1001_v23 }
 0x207   :  { %2197 = vpow2.f32 %v1003_v24 }
 0x20c   :  { %v995_v25 = vpop.permute.xlu1 %994 }
 0x20d   :  { %v1000_v26 = vrot.slane %v995_v25, %v2424_v21 }
 0x20f   :  { %v1002_v28 = vsub.f32 %v961_v2, %v1000_v26 }
 0x211   :  { %v1005_v30 = vmul.f32 1.442695, %v1002_v28 }
 0x213   :  { %2199 = vpow2.f32 %v1005_v30 }
 0x214   :  { %v2198_v32 = vpop.eup %2197  ;;  %2201 = vpow2.f32 %v979_v49 }
 0x215   :  { %v1011_v33 = vsel %vm964_vm3, %v2198_v32, 0.0  ;;  %v1024_v34 = vsel %vm1022_vm4, %v2198_v32, 0  ;;  %2203 = vpow2.f32 %v981_v50 }
 0x216   :  { %1012 = vadd.xlane.f32.xlu0 %v1011_v33  ;;  %v1092_v35 = vand.u32 4294901760, %v1024_v34 }
 0x218   :  { %v1093_v37 = vsub.f32 %v1024_v34, %v1092_v35  ;;  %2131 = vmatmul.mubr.f32.vlgmr.msra.gmra.mxu1 %v1092_v35 }
 0x219   :  { %2139 = vmatpush3.msra.mxu1 %v2380_v29  ;;  %2140 = vmatprep.mubr.msk.f32.mxu1 %vm2304_vm0, %v2303_v0 }
 0x21a   :  { %v1094_v38 = vand.u32 4294901760, %v1093_v37  ;;  %2148 = vmatprep.subr.mxu1 %v2303_v0 }
 0x21c   :  { %2141 = vmatmul.mubr.f32.vlgmr.msra.gmra.mxu1 %v1094_v38  ;;  %v1095_v39 = vsub.f32 %v1093_v37, %v1094_v38 }
 0x21d   :  { %2149 = vmatpush3.msra.mxu1 %v2380_v29  ;;  %2150 = vmatprep.mubr.msk.f32.mxu1 %vm2304_vm0, %v2303_v0 }
 0x21e   :  { %v1096_v40 = vand.u32 4294901760, %v1095_v39  ;;  %2158 = vmatprep.subr.mxu1 %v2303_v0 }
 0x220   :  { %v2200_v42 = vpop.eup %2199  ;;  %2126 = vmatmul.mubr.f32.vlgmr.msra.gmra.mxu0 %v1096_v40  ;;  %2151 = vmatmul.mubr.f32.vlgmr.msra.gmra.mxu1 %v1092_v35 }
 0x221   :  { %v1014_v43 = vsel %vm964_vm3, %v2200_v42, 0.0  ;;  %2134 = vmatpush3.msra.mxu0 %v1134_v14  ;;  %2135 = vmatprep.mubr.msk.f32.mxu0 %vm2304_vm0, %v2303_v0  ;;  %v1473_v44 = vsel %vm1022_vm4, %v2200_v42, 0  ;;  %v2202_v51 = vpop.eup %2201 }
 0x222   :  { %1015 = vadd.xlane.f32.xlu1 %v1014_v43  ;;  %2159 = vmatpush3.msra.mxu1 %v1586_v41  ;;  %v1541_v29 = vand.u32 4294901760, %v1473_v44  ;;  %v1009_v53 = vmul.f32 %v2202_v51, %v1007_v52  ;;  %v2204_v56 = vpop.eup %2203 }
 0x223   :  { %2160 = vmatprep.mubr.msk.f32.mxu1 %vm2304_vm0, %v2303_v0  ;;  %2143 = vmatprep.subr.mxu0 %v2303_v0  ;;  %v1010_v59 = vmul.f32 %v2204_v56, %v1008_v57 }
 0x224   :  { %2136 = vmatmul.mubr.f32.vlgmr.msra.gmra.mxu0 %v1093_v37  ;;  %v1542_v45 = vsub.f32 %v1473_v44, %v1541_v29  ;;  %2161 = vmatmul.mubr.f32.vlgmr.msra.gmra.mxu1 %v1541_v29 }
 0x225   :  { %2168 = vmatprep.subr.mxu1 %v2303_v0  ;;  %2144 = vmatpush3.msra.mxu0 %v1135_v16 }
 0x226   :  { %2145 = vmatprep.mubr.msk.f32.mxu0 %vm2304_vm0, %v2303_v0  ;;  %2169 = vmatpush3.msra.mxu1 %v1506_v27  ;;  %v1543_v46 = vand.u32 4294901760, %v1542_v45 }
 0x227   :  { %2170 = vmatprep.mubr.msk.f32.mxu1 %vm2304_vm0, %v2303_v0  ;;  %2153 = vmatprep.subr.mxu0 %v2303_v0 }
 0x228   :  { %2146 = vmatmul.mubr.f32.vlgmr.msra.gmra.mxu0 %v1092_v35  ;;  %2171 = vmatmul.mubr.f32.vlgmr.msra.gmra.mxu1 %v1543_v46  ;;  %v1544_v47 = vsub.f32 %v1542_v45, %v1543_v46 }
 0x229   :  { %2178 = vmatprep.subr.mxu1 %v2303_v0  ;;  %2154 = vmatpush3.msra.mxu0 %v1506_v27 }
 0x22a   :  { %2155 = vmatprep.mubr.msk.f32.mxu0 %vm2304_vm0, %v2303_v0  ;;  %2179 = vmatpush3.msra.mxu1 %v1506_v27  ;;  %v1545_v48 = vand.u32 4294901760, %v1544_v47 }
 0x22b   :  { %2180 = vmatprep.mubr.msk.f32.mxu1 %vm2304_vm0, %v2303_v0  ;;  %2163 = vmatprep.subr.mxu0 %v2303_v0 }
 0x22c   :  { %2156 = vmatmul.mubr.f32.vlgmr.msra.gmra.mxu0 %v1545_v48  ;;  %2181 = vmatmul.mubr.f32.vlgmr.msra.gmra.mxu1 %v1541_v29 }
 0x22d   :  { %2164 = vmatpush3.msra.mxu0 %v1583_v31  ;;  %2165 = vmatprep.mubr.msk.f32.mxu0 %vm2304_vm0, %v2303_v0 }
 0x22e   :  { %2173 = vmatprep.subr.mxu0 %v2303_v0 }
 0x230   :  { %2166 = vmatmul.mubr.f32.vlgmr.msra.gmra.mxu0 %v1542_v45 }
 0x231   :  { %2174 = vmatpush3.msra.mxu0 %v1584_v36  ;;  %2175 = vmatprep.mubr.msk.f32.mxu0 %vm2304_vm0, %v2303_v0 }
 0x234   :  { %2176 = vmatmul.mubr.f32.vlgmr.msra.gmra.mxu0 %v1541_v29 }
 0x29f   :  { %v1013_v54 = vpop.xlane.xlu0 %1012 }
 0x2a0   :  { %v1017_v55 = vadd.f32 %v1013_v54, %v1009_v53 }
 0x2a2   :  { %1020 = vst.msk [vmem:[#allocation3] sm:$0x1] %vm47_vm2, %v1017_v55 }
 0x2a9   :  { %v1955_v58 = vld [vmem:[#allocation3] sm:$0x1] }
 0x2aa   :  { %1959 = vperm.xlu0 %2196, %v1955_v58  }
 0x2ab   :  { %v1016_v60 = vpop.xlane.xlu1 %1015 }
 0x2ac   :  { %v1018_v61 = vadd.f32 %v1016_v60, %v1010_v59 }
 0x2ae   :  { %1021 = vst.msk [vmem:[#allocation3 + $0x1] sm:$0x1] %vm47_vm2, %v1018_v61  ;;  %1925 = vperm.xlu0 %2196, %v2202_v51  }
 0x2b2   :  { %1934 = vperm.xlu0 %2196, %v2204_v56  }
 0x2b5   :  { %v1956_v62 = vld [vmem:[#allocation3 + $0x1] sm:$0x1] }
 0x2b6   :  { %1968 = vperm.xlu1 %2195, %v1956_v62  }
 0x2b7   :  { %2260 = shalt.err (!%p2257_p0)
}
 0x2b8   :  { %2004 = dma.vmem_to_hbm [thread:$0]  %s1999_s1, 32, %s2499_s3, [#allocation12], %s2298_s15, %s2298_s15, %s2299_s16   ;;  %v1921_v38 = vld [vmem:[#allocation4] sm:$0x1]  ;;  %v1922_v41 = vld [vmem:[#allocation4 + $0x1] sm:$0x1] }
 0x2b9   :  { %s2308_s3 = smov [#allocation10]  }
 0x2ba   :  { %s1986_s29 = sshll.u32 %s2308_s3, 4  ;;  %s1987_s29 = int_to_ptr.vmem [resolvable:$true] %s1986_s29 }
 0x2bb   :  { %s2269_s30 = scalar_lea.vmem %s1987_s29, 32  ;;  %p2274_p2 = scmp.lt.s32.totalorder %s1987_s29, %s1987_s29 }
 0x2bc   :  { %p2270_p1 = scmp.ne.s32.totalorder %s1987_s29, %s2269_s30  ;;  %p2275_p3 = scmp.lt.s32.totalorder %s2269_s30, %s2269_s30 }
 0x2be   :  { %p2276_p4 = por %p2275_p3, %p2274_p2 }
 0x2c0   :  { %p2277_p5 = pnand %p2276_p4, %p2270_p1 }
 0x2d8   :  { %v1174_v0 = vpop.f32.mrf.mxu1 }
 0x2da   :  { %v2132_v63 = vpop.f32.mrf.mxu1 }
 0x2dc   :  { %v1322_v2 = vpop.f32.mrf.mxu1 }
 0x2de   :  { %v2142_v4 = vpop.f32.mrf.mxu1 }
 0x2e0   :  { %v1098_v5 = vpop.f32.mrf.mxu0  ;;  %v1468_v6 = vpop.f32.mrf.mxu1 }
 0x2e1   :  { %v1175_v7 = vadd.f32 %v1174_v0, %v1098_v5 }
 0x2e2   :  { %v2127_v8 = vpop.f32.mrf.mxu0  ;;  %v2152_v9 = vpop.f32.mrf.mxu1 }
 0x2e4   :  { %v1248_v10 = vpop.f32.mrf.mxu0  ;;  %v1623_v11 = vpop.f32.mrf.mxu1 }
 0x2e5   :  { %v1249_v12 = vadd.f32 %v1248_v10, %v1175_v7 }
 0x2e6   :  { %v2137_v13 = vpop.f32.mrf.mxu0  ;;  %v2162_v14 = vpop.f32.mrf.mxu1 }
 0x2e7   :  { %v1323_v15 = vadd.f32 %v1322_v2, %v1249_v12 }
 0x2e8   :  { %v1396_v16 = vpop.f32.mrf.mxu0  ;;  %v1771_v17 = vpop.f32.mrf.mxu1 }
 0x2e9   :  { %v1397_v18 = vadd.f32 %v1396_v16, %v1323_v15 }
 0x2ea   :  { %v2147_v19 = vpop.f32.mrf.mxu0  ;;  %v2172_v20 = vpop.f32.mrf.mxu1 }
 0x2eb   :  { %v1469_v22 = vadd.f32 %v1468_v6, %v1397_v18 }
 0x2ec   :  { %v1547_v1 = vpop.f32.mrf.mxu0  ;;  %v1917_v23 = vpop.f32.mrf.mxu1 }
 0x2ed   :  { %v1624_v26 = vadd.f32 %v1623_v11, %v1547_v1 }
 0x2ee   :  { %v2157_v24 = vpop.f32.mrf.mxu0  ;;  %v2182_v25 = vpop.f32.mrf.mxu1 }
 0x2f0   :  { %v1697_v27 = vpop.f32.mrf.mxu0 }
 0x2f1   :  { %v1698_v28 = vadd.f32 %v1697_v27, %v1624_v26 }
 0x2f2   :  { %v2167_v30 = vpop.f32.mrf.mxu0 }
 0x2f3   :  { %v1772_v31 = vadd.f32 %v1771_v17, %v1698_v28 }
 0x2f4   :  { %v1845_v32 = vpop.f32.mrf.mxu0 }
 0x2f5   :  { %v1846_v33 = vadd.f32 %v1845_v32, %v1772_v31 }
 0x2f6   :  { %v2177_v34 = vpop.f32.mrf.mxu0 }
 0x2f7   :  { %v1918_v35 = vadd.f32 %v1917_v23, %v1846_v33 }
 0x325   :  { %v1960_v36 = vpop.permute.xlu0 %1959 }
 0x326   :  { %v1965_v37 = vrot.slane %v1960_v36, %v2424_v21 }
 0x328   :  { %2205 = vrcp.f32 %v1965_v37 }
 0x329   :  { %v1926_v3 = vpop.permute.xlu0 %1925 }
 0x32a   :  { %v1931_v39 = vrot.slane %v1926_v3, %v2424_v21 }
 0x32c   :  { %v1941_v40 = vmul.f32 %v1931_v39, %v1921_v38 }
 0x32d   :  { %v1935_v42 = vpop.permute.xlu0 %1934 }
 0x32e   :  { %v1943_v43 = vadd.f32 %v1941_v40, %v1469_v22  ;;  %v1940_v44 = vrot.slane %v1935_v42, %v2424_v21 }
 0x330   :  { %1946 = vst.msk [vmem:[#allocation4] sm:$0x1] %vm52_vm5, %v1943_v43  ;;  %v1942_v29 = vmul.f32 %v1940_v44, %v1922_v41 }
 0x331   :  { %v1969_v45 = vpop.permute.xlu1 %1968 }
 0x332   :  { %v1944_v46 = vadd.f32 %v1942_v29, %v1918_v35  ;;  %v1974_v47 = vrot.slane %v1969_v45, %v2424_v21 }
 0x334   :  { %1947 = vst.msk [vmem:[#allocation4 + $0x1] sm:$0x1] %vm52_vm5, %v1944_v46  ;;  %2207 = vrcp.f32 %v1974_v47 }
 0x335   :  { %v2206_v48 = vpop.eup %2205 }
 0x337   :  { %v1953_v49 = vld [vmem:[#allocation4] sm:$0x1] }
 0x338   :  { %v1976_v50 = vmul.f32 %v2206_v48, %v1953_v49 }
 0x33a   :  { %1979 = vst.msk [vmem:[#allocation10] sm:$0x1] %vm52_vm5, %v1976_v50 }
 0x33b   :  { %v1954_v52 = vld [vmem:[#allocation4 + $0x1] sm:$0x1] }
 0x341   :  { %v2208_v51 = vpop.eup %2207 }
 0x342   :  { %v1978_v53 = vmul.f32 %v2208_v51, %v1954_v52 }
 0x344   :  { %1980 = vst.msk [vmem:[#allocation10 + $0x1] sm:$0x1] %vm52_vm5, %v1978_v53 }
 0x345   :  { %2280 = shalt.err (!%p2277_p5)
}
 0x346   :  { %1992 = dma.vmem_to_hbm [thread:$0]  %s1987_s29, 32, %s2498_s2, [#allocation7], %s2298_s15, %s2298_s15, %s2299_s16  }
 0x347   :  { %2293 = dma.done.wait [#allocation7], 32  }
 0x348   :  { %2294 = vsyncadd [#allocation7], 4294967264 }
 0x349   :  { %2295 = dma.done.wait [#allocation12], 32  }
 0x34a   :  { %2296 = vsyncadd [#allocation12], 4294967264 }
 0x34b   :  { %2011 = vsyncpa [#allocation6], 1 }
 0x34c   :  { %2012 = vsyncpa [#allocation9], 1 }
 0x34d   :  { %2013 = vsyncpa [#allocation7], 1 }
 0x34e   :  { %2014 = vsyncpa [#allocation12], 1 }

</bundles_post_ra>
